<compile_context>
chip_gen: v5e
topology: v5e:2x2
jax: 0.10.0
libtpu: 0.0.40
codegen_flags: <defaults>
</compile_context>

<pallas_src>
import functools
import math

import jax
import jax.numpy as jnp
from jax.experimental import pallas as pl
from jax.experimental.pallas import tpu as pltpu


# ----------------------------------------------------------------------------
# In-kernel math helpers (f32 VPU/EUP math)
# ----------------------------------------------------------------------------
def _erf(x):
    # Abramowitz & Stegun 7.1.26 rational approximation (abs err ~1.5e-7).
    a1, a2, a3, a4, a5 = 0.254829592, -0.284496736, 1.421413741, -1.453152027, 1.061405429
    p = 0.3275911
    ax = jnp.abs(x)
    t = 1.0 / (1.0 + p * ax)
    poly = ((((a5 * t + a4) * t + a3) * t + a2) * t + a1) * t
    y = 1.0 - poly * jnp.exp(-ax * ax)
    return jnp.where(x >= 0, y, -y)


def _gelu(x):
    # Exact (erf-based) GELU, matching transformers' hidden_act="gelu".
    return 0.5 * x * (1.0 + _erf(x * (1.0 / math.sqrt(2.0))))


def _pick_tile(dim, target, align):
    """Largest divisor of `dim` that is <= target and a multiple of `align`.

    Falls back to the full dim (always legal: block == full array dim)."""
    if dim <= target:
        return dim
    t = (target // align) * align
    while t >= align:
        if dim % t == 0:
            return t
        t -= align
    return dim


def _mosaic_params(semantics, vmem_bytes=None):
    """CompilerParams with an explicit VMEM budget (>= default, <= 64 MiB)."""
    kw = dict(dimension_semantics=semantics)
    if vmem_bytes is not None:
        kw["vmem_limit_bytes"] = int(min(max(vmem_bytes, 32 * 1024 * 1024),
                                         64 * 1024 * 1024))
    return pltpu.CompilerParams(**kw)


# ----------------------------------------------------------------------------
# Kernels
# ----------------------------------------------------------------------------
def _dense_act_kernel(x_ref, w_ref, b_ref, o_ref, *, activation):
    """x@w + b (optional GELU). Weight block = full (K, N), resident in VMEM.

    grid = (M//tm,).  Full-K dot accumulates in f32 on the MXU."""
    y = jnp.dot(x_ref[...], w_ref[...], preferred_element_type=jnp.float32)
    y = y + b_ref[...].astype(jnp.float32)
    if activation == "gelu":
        y = _gelu(y)
    o_ref[...] = y.astype(o_ref.dtype)


def _dense_ln_kernel(*refs, eps, activation, has_residual):
    """x@w + b (+ optional GELU) (+ optional residual) then LayerNorm.

    Weight block = full (K, N), resident in VMEM.  grid = (M//tm,)."""
    if has_residual:
        x_ref, w_ref, b_ref, r_ref, g_ref, beta_ref, o_ref = refs
    else:
        x_ref, w_ref, b_ref, g_ref, beta_ref, o_ref = refs
        r_ref = None
    y = jnp.dot(x_ref[...], w_ref[...], preferred_element_type=jnp.float32)
    y = y + b_ref[...].astype(jnp.float32)
    if activation == "gelu":
        y = _gelu(y)
    if has_residual:
        y = y + r_ref[...].astype(jnp.float32)
    mu = jnp.mean(y, axis=-1, keepdims=True)
    d = y - mu
    var = jnp.mean(d * d, axis=-1, keepdims=True)
    o_ref[...] = (d * jax.lax.rsqrt(var + eps)
                  * g_ref[...].astype(jnp.float32)
                  + beta_ref[...].astype(jnp.float32)).astype(o_ref.dtype)


def _layernorm_kernel(x_ref, g_ref, b_ref, o_ref, *, eps):
    x = x_ref[...].astype(jnp.float32)
    mu = jnp.mean(x, axis=-1, keepdims=True)
    d = x - mu
    var = jnp.mean(d * d, axis=-1, keepdims=True)
    o_ref[...] = (d * jax.lax.rsqrt(var + eps)
                  * g_ref[...].astype(jnp.float32)
                  + b_ref[...].astype(jnp.float32)).astype(o_ref.dtype)


def _emb_ln_softmask_kernel(x_ref, g_ref, b_ref, m_ref, p_ref, e_ref, c_ref, *, eps):
    """Fused embedding LayerNorm + soft-mask mix.

    x block: (1, S, H) raw word+pos+tok sum; mask_embed: (S, H) (already
    LayerNormed, identical across batch); prob: (1, S, 1).
    Outputs: embed (1, S, H) and cor_embed = p*mask + (1-p)*embed."""
    x = x_ref[0].astype(jnp.float32)                      # (S, H)
    mu = jnp.mean(x, axis=-1, keepdims=True)
    d = x - mu
    var = jnp.mean(d * d, axis=-1, keepdims=True)
    e = (d * jax.lax.rsqrt(var + eps) * g_ref[...].astype(jnp.float32)
         + b_ref[...].astype(jnp.float32))                # (S, H)
    e_ref[0] = e.astype(e_ref.dtype)
    p = p_ref[0].astype(jnp.float32)                      # (S, 1)
    m = m_ref[...].astype(jnp.float32)                    # (S, H)
    c_ref[0] = (p * m + (1.0 - p) * e).astype(c_ref.dtype)


def _attention_kernel(qkv_ref, mask_ref, o_ref, *, num_heads, head_dim, scale):
    """Per-batch self-attention from the fused QKV block.

    qkv block: (1, S, 3H) bf16; mask block: full (B, S) additive f32 (resident,
    sliced per batch with pl.ds); output block: (1, S, H) bf16.  Each head's
    context is stored directly into its lane slice (no concatenate temp)."""
    b = pl.program_id(0)
    qkv = qkv_ref[0]                                        # (S, 3H)
    mask = mask_ref[pl.ds(b, 1), :].astype(jnp.float32)     # (1, S)
    H = num_heads * head_dim
    for h in range(num_heads):
        lo = h * head_dim
        q = qkv[:, lo:lo + head_dim]
        k = qkv[:, H + lo:H + lo + head_dim]
        v = qkv[:, 2 * H + lo:2 * H + lo + head_dim]
        # Fold 1/sqrt(dh) into q (S*dh muls instead of S*S).
        qs = (q.astype(jnp.float32) * scale).astype(qkv.dtype)
        s = jax.lax.dot_general(qs, k, (((1,), (1,)), ((), ())),
                                preferred_element_type=jnp.float32)
        s = s + mask
        s = s - jnp.max(s, axis=-1, keepdims=True)
        p = jnp.exp(s)
        p = p * pl.reciprocal(jnp.sum(p, axis=-1, keepdims=True), approx=True)
        ctx = jnp.dot(p.astype(v.dtype), v, preferred_element_type=jnp.float32)
        o_ref[0, :, lo:lo + head_dim] = ctx.astype(o_ref.dtype)


def _decoder_loss_kernel(x_ref, w_ref, b_ref, lab_ref, logit_ref, nll_ref,
                         acc_ref, m_ref, l_ref, pick_ref):
    """Vocab projection fused with log-softmax + NLL gather.

    grid = (Mt, Vt, Kt); online logsumexp over vocab tiles (m/l scratch),
    label logit picked via iota compare, NLL written on the final tile.
    Logits are written back in bf16; all loss math stays f32 in VMEM."""
    j = pl.program_id(1)
    k = pl.program_id(2)
    nj = pl.num_programs(1)
    nk = pl.num_programs(2)

    @pl.when(k == 0)
    def _():
        acc_ref[...] = jnp.zeros_like(acc_ref)

    @pl.when((j == 0) & (k == 0))
    def _():
        m_ref[...] = jnp.full_like(m_ref, -jnp.inf)
        l_ref[...] = jnp.zeros_like(l_ref)
        pick_ref[...] = jnp.zeros_like(pick_ref)

    acc_ref[...] += jnp.dot(x_ref[...], w_ref[...],
                            preferred_element_type=jnp.float32)

    @pl.when(k == nk - 1)
    def _():
        logits = acc_ref[...] + b_ref[...].astype(jnp.float32)
        logit_ref[...] = logits.astype(logit_ref.dtype)

        # online logsumexp update across vocab tiles
        tile_m = jnp.max(logits, axis=-1, keepdims=True)
        m_new = jnp.maximum(m_ref[...], tile_m)
        l_ref[...] = (l_ref[...] * jnp.exp(m_ref[...] - m_new)
                      + jnp.sum(jnp.exp(logits - m_new), axis=-1, keepdims=True))
        m_ref[...] = m_new

        # pick the label logit if it falls inside this vocab tile
        tn = logits.shape[-1]
        col = jax.lax.broadcasted_iota(jnp.int32, logits.shape, 1) + j * tn
        lab = lab_ref[...]                                     # (tm, 1) int32
        pick_ref[...] += jnp.sum(jnp.where(col == lab, logits, 0.0),
                                 axis=-1, keepdims=True)

        @pl.when(j == nj - 1)
        def _():
            lse = m_ref[...] + jnp.log(l_ref[...])
            valid = lab != -100                                # ignore_index
            nll_ref[...] = jnp.where(valid, lse - pick_ref[...], 0.0)


# ----------------------------------------------------------------------------
# Pallas wrappers
# ----------------------------------------------------------------------------
def dense_act(x, w, b, activation=None, out_dtype=jnp.bfloat16, tm=512):
    """x@w + b (optional GELU); full weight resident in VMEM, grid over M."""
    M, K = x.shape
    N = w.shape[1]
    tm = _pick_tile(M, tm, 8)
    grid = (M // tm,)
    est = 2 * (tm * K * 2) + 2 * (K * N * 2) + 2 * (tm * N * 2) + 2 * N * 4
    return pl.pallas_call(
        functools.partial(_dense_act_kernel, activation=activation),
        grid=grid,
        in_specs=[pl.BlockSpec((tm, K), lambda i: (i, 0)),
                  pl.BlockSpec((K, N), lambda i: (0, 0)),
                  pl.BlockSpec((1, N), lambda i: (0, 0))],
        out_specs=pl.BlockSpec((tm, N), lambda i: (i, 0)),
        out_shape=jax.ShapeDtypeStruct((M, N), out_dtype),
        compiler_params=_mosaic_params(("parallel",), int(est * 1.5)),
    )(x.astype(jnp.bfloat16), w, b.reshape(1, N))


def dense_layernorm(x, w, b, gamma, beta, eps, residual=None, activation=None,
                    out_dtype=jnp.bfloat16, tm=512):
    """x@w + b (+gelu) (+residual) + LayerNorm; weight resident, grid over M."""
    M, K = x.shape
    N = w.shape[1]
    tm = _pick_tile(M, tm, 8)
    grid = (M // tm,)
    has_residual = residual is not None

    in_specs = [pl.BlockSpec((tm, K), lambda i: (i, 0)),
                pl.BlockSpec((K, N), lambda i: (0, 0)),
                pl.BlockSpec((1, N), lambda i: (0, 0))]
    args = [x.astype(jnp.bfloat16), w, b.reshape(1, N)]
    if has_residual:
        in_specs.append(pl.BlockSpec((tm, N), lambda i: (i, 0)))
        args.append(residual.astype(jnp.bfloat16))
    in_specs += [pl.BlockSpec((1, N), lambda i: (0, 0)),
                 pl.BlockSpec((1, N), lambda i: (0, 0))]
    args += [gamma.reshape(1, N), beta.reshape(1, N)]

    est = (2 * (tm * K * 2) + 2 * (K * N * 2) + 2 * (tm * N * 2)
           + (2 * (tm * N * 2) if has_residual else 0) + 4 * N * 4)
    kernel = functools.partial(_dense_ln_kernel, eps=eps, activation=activation,
                               has_residual=has_residual)
    return pl.pallas_call(
        kernel,
        grid=grid,
        in_specs=in_specs,
        out_specs=pl.BlockSpec((tm, N), lambda i: (i, 0)),
        out_shape=jax.ShapeDtypeStruct((M, N), out_dtype),
        compiler_params=_mosaic_params(("parallel",), int(est * 1.5)),
    )(*args)


def layernorm(x, g, b, eps, out_dtype=jnp.bfloat16, tm=512):
    M, H = x.shape
    tm = _pick_tile(M, tm, 8)
    return pl.pallas_call(
        functools.partial(_layernorm_kernel, eps=eps),
        grid=(M // tm,),
        in_specs=[pl.BlockSpec((tm, H), lambda i: (i, 0)),
                  pl.BlockSpec((1, H), lambda i: (0, 0)),
                  pl.BlockSpec((1, H), lambda i: (0, 0))],
        out_specs=pl.BlockSpec((tm, H), lambda i: (i, 0)),
        out_shape=jax.ShapeDtypeStruct((M, H), out_dtype),
        compiler_params=_mosaic_params(("parallel",)),
    )(x, g.reshape(1, H), b.reshape(1, H))


def embed_ln_softmask(emb_sum, gamma, beta, mask_embed, prob, eps):
    """Fused embedding LayerNorm + soft-mask mix; returns (embed, cor_embed)."""
    B, S, H = emb_sum.shape
    return pl.pallas_call(
        functools.partial(_emb_ln_softmask_kernel, eps=eps),
        grid=(B,),
        in_specs=[pl.BlockSpec((1, S, H), lambda b: (b, 0, 0)),
                  pl.BlockSpec((1, H), lambda b: (0, 0)),
                  pl.BlockSpec((1, H), lambda b: (0, 0)),
                  pl.BlockSpec((S, H), lambda b: (0, 0)),
                  pl.BlockSpec((1, S, 1), lambda b: (b, 0, 0))],
        out_specs=(pl.BlockSpec((1, S, H), lambda b: (b, 0, 0)),
                   pl.BlockSpec((1, S, H), lambda b: (b, 0, 0))),
        out_shape=(jax.ShapeDtypeStruct((B, S, H), jnp.bfloat16),
                   jax.ShapeDtypeStruct((B, S, H), jnp.bfloat16)),
        compiler_params=_mosaic_params(("parallel",)),
    )(emb_sum, gamma.reshape(1, H), beta.reshape(1, H), mask_embed,
      prob.astype(jnp.float32))


def attention(qkv, ext_mask, num_heads, head_dim):
    B, S, threeH = qkv.shape
    H = num_heads * head_dim
    kernel = functools.partial(_attention_kernel, num_heads=num_heads,
                               head_dim=head_dim,
                               scale=1.0 / math.sqrt(head_dim))
    return pl.pallas_call(
        kernel,
        grid=(B,),
        in_specs=[pl.BlockSpec((1, S, threeH), lambda b: (b, 0, 0)),
                  pl.BlockSpec((B, S), lambda b: (0, 0))],   # resident full mask
        out_specs=pl.BlockSpec((1, S, H), lambda b: (b, 0, 0)),
        out_shape=jax.ShapeDtypeStruct((B, S, H), jnp.bfloat16),
        compiler_params=_mosaic_params(("parallel",)),
    )(qkv, ext_mask)


def decoder_with_loss(x, w, b, labels, tm=512, tn=512, tk=256):
    """Returns (logits[M,V] bf16, per-row masked NLL[M,1] f32).

    Vocab is padded to a multiple of 128 (pad bias = -1e30) so the vocab tile
    never collapses to the full dimension (critical on v7x's 64 MiB VMEM)."""
    M, K = x.shape
    V = w.shape[1]
    Vp = ((V + 127) // 128) * 128
    if Vp != V:
        # TODO(synk): hoist the weight/bias padding to parameter setup to avoid
        # re-padding the ~32 MB vocab matrix on every forward call.
        w = jnp.pad(w, ((0, 0), (0, Vp - V)))
        b = jnp.concatenate([b, jnp.full((Vp - V,), -1e30, b.dtype)])

    tm = _pick_tile(M, tm, 8)
    tn = _pick_tile(Vp, tn, 128)
    tk = _pick_tile(K, tk, 128)
    grid = (M // tm, Vp // tn, K // tk)

    est = (2 * (tm * tk * 2 + tk * tn * 2 + tn * 4 + tm * 4 + tm * tn * 2 + tm * 4)
           + tm * tn * 4 + 3 * tm * 4)
    logits, nll = pl.pallas_call(
        _decoder_loss_kernel,
        grid=grid,
        in_specs=[pl.BlockSpec((tm, tk), lambda i, j, k: (i, k)),
                  pl.BlockSpec((tk, tn), lambda i, j, k: (k, j)),
                  pl.BlockSpec((1, tn), lambda i, j, k: (0, j)),
                  pl.BlockSpec((tm, 1), lambda i, j, k: (i, 0))],
        out_specs=(pl.BlockSpec((tm, tn), lambda i, j, k: (i, j)),
                   pl.BlockSpec((tm, 1), lambda i, j, k: (i, 0))),
        out_shape=(jax.ShapeDtypeStruct((M, Vp), jnp.bfloat16),
                   jax.ShapeDtypeStruct((M, 1), jnp.float32)),
        scratch_shapes=[pltpu.VMEM((tm, tn), jnp.float32),
                        pltpu.VMEM((tm, 1), jnp.float32),
                        pltpu.VMEM((tm, 1), jnp.float32),
                        pltpu.VMEM((tm, 1), jnp.float32)],
        compiler_params=_mosaic_params(("parallel", "arbitrary", "arbitrary"),
                                       int(est * 1.25)),
    )(x.astype(jnp.bfloat16), w, b.reshape(1, Vp), labels.reshape(M, 1))
    if Vp != V:
        logits = logits[:, :V]
    return logits, nll


# ----------------------------------------------------------------------------
# Model glue (embedding gathers done in XLA, parameter setup)
# ----------------------------------------------------------------------------
def init_params(key, cfg):
    H = cfg["hidden_size"]
    V = cfg["vocab_size"]
    I = cfg["intermediate_size"]
    P = cfg["max_position_embeddings"]
    T = cfg["type_vocab_size"]
    L = cfg["num_hidden_layers"]
    keys = iter(jax.random.split(key, 128))

    def nrm(shape):
        return 0.02 * jax.random.normal(next(keys), shape, jnp.float32)

    def wmat(shape):                       # matmul weights stored bf16 (MXU)
        return nrm(shape).astype(jnp.bfloat16)

    params = {
        "word_emb": nrm((V, H)),
        "pos_emb": nrm((P, H)),
        "tok_emb": nrm((T, H)),
        "emb_ln_g": jnp.ones((H,), jnp.float32),
        "emb_ln_b": jnp.zeros((H,), jnp.float32),
        "tr_w": wmat((H, H)),
        "tr_b": jnp.zeros((H,), jnp.float32),
        "tr_ln_g": jnp.ones((H,), jnp.float32),
        "tr_ln_b": jnp.zeros((H,), jnp.float32),
        "dec_w": wmat((H, V)),
        "dec_b": jnp.zeros((V,), jnp.float32),
        "layers": [],
    }
    for _ in range(L):
        params["layers"].append({
            # Q, K, V fused into one (H, 3H) projection.
            "qkv_w": wmat((H, 3 * H)), "qkv_b": jnp.zeros((3 * H,), jnp.float32),
            "ao_w": wmat((H, H)), "ao_b": jnp.zeros((H,), jnp.float32),
            "ao_ln_g": jnp.ones((H,), jnp.float32),
            "ao_ln_b": jnp.zeros((H,), jnp.float32),
            "i_w": wmat((H, I)), "i_b": jnp.zeros((I,), jnp.float32),
            "o_w": wmat((I, H)), "o_b": jnp.zeros((H,), jnp.float32),
            "o_ln_g": jnp.ones((H,), jnp.float32),
            "o_ln_b": jnp.zeros((H,), jnp.float32),
        })
    return params


def bert_layer(p, x, ext_mask, B, S, nH, dh, eps):
    H = nH * dh
    qkv = dense_act(x, p["qkv_w"], p["qkv_b"])                    # (B*S, 3H)
    ctx = attention(qkv.reshape(B, S, 3 * H), ext_mask, nH, dh)   # (B, S, H)
    x1 = dense_layernorm(ctx.reshape(B * S, H), p["ao_w"], p["ao_b"],
                         p["ao_ln_g"], p["ao_ln_b"], eps, residual=x)
    inter = dense_act(x1, p["i_w"], p["i_b"], activation="gelu")  # (B*S, I)
    x2 = dense_layernorm(inter, p["o_w"], p["o_b"],
                         p["o_ln_g"], p["o_ln_b"], eps, residual=x1)
    return x2


def forward(params, cfg, input_ids, token_type_ids, attention_mask, prob,
            cor_labels, residual_connection=False):
    B, S = input_ids.shape
    H = cfg["hidden_size"]
    V = cfg["vocab_size"]
    nH = cfg["num_attention_heads"]
    dh = H // nH
    eps = cfg["layer_norm_eps"]

    # text_labels[text_labels == 0] = -100  (CrossEntropyLoss ignore index)
    text_labels = jnp.where(cor_labels == 0, -100, cor_labels).astype(jnp.int32)

    # embeddings(input_ids, token_type_ids): gathers in XLA, LN fused below.
    word = jnp.take(params["word_emb"], input_ids, axis=0)
    tok = jnp.take(params["tok_emb"], token_type_ids, axis=0)
    pos = params["pos_emb"][:S][None, :, :]
    emb_sum = word + tok + pos                                    # (B, S, H) f32

    # mask_embed: identical across batch -> compute once per position (S, H)
    mask_row = params["word_emb"][cfg["mask_token_id"]] + params["tok_emb"][0]
    mask_pos = mask_row[None, :] + params["pos_emb"][:S]
    mask_embed = layernorm(mask_pos, params["emb_ln_g"], params["emb_ln_b"], eps)

    # fused: embed = LN(emb_sum); cor_embed = prob*mask_embed + (1-prob)*embed
    embed, cor_embed = embed_ln_softmask(emb_sum, params["emb_ln_g"],
                                         params["emb_ln_b"], mask_embed, prob, eps)

    # extended additive attention mask: 0 keep, -10000 pad   (B, S)
    ext_mask = (1.0 - attention_mask.astype(jnp.float32)) * -10000.0

    x = cor_embed.reshape(B * S, H)
    embed_flat = embed.reshape(B * S, H)
    for lp in params["layers"]:
        x = bert_layer(lp, x, ext_mask, B, S, nH, dh, eps)
    sequence_output = x + embed_flat if residual_connection else x   # (B*S, H)

    # BertOnlyMLMHead: transform dense + gelu + LN fused, then decoder + loss.
    h = dense_layernorm(sequence_output, params["tr_w"], params["tr_b"],
                        params["tr_ln_g"], params["tr_ln_b"], eps,
                        residual=None, activation="gelu")
    logits, nll = decoder_with_loss(h, params["dec_w"], params["dec_b"],
                                    text_labels.reshape(-1))
    prediction_scores = logits.reshape(B, S, V)       # bf16 logits (see notes)

    # CrossEntropyLoss(ignore_index=-100, reduction='mean')
    valid = (text_labels.reshape(-1) != -100).astype(jnp.float32)
    cor_loss = jnp.sum(nll) / jnp.maximum(jnp.sum(valid), 1.0)

    return cor_loss, prediction_scores, sequence_output.reshape(B, S, H).astype(jnp.float32)


# ----------------------------------------------------------------------------
# Demo
# ----------------------------------------------------------------------------
if __name__ == "__main__":
    cfg = dict(
        vocab_size=128,
        hidden_size=32,
        num_hidden_layers=2,
        num_attention_heads=2,
        intermediate_size=64,
        max_position_embeddings=16,
        type_vocab_size=2,
        layer_norm_eps=1e-12,
        mask_token_id=4,
    )
    B, S = 2, 8

    root = jax.random.PRNGKey(0)
    k_params, k_ids, k_lab, k_prob = jax.random.split(root, 4)
    params = init_params(k_params, cfg)

    attention_mask = jnp.ones((B, S), jnp.int32).at[1, 6:].set(0)  # pad tail of ex 1
    input_ids = jax.random.randint(k_ids, (B, S), 5, cfg["vocab_size"]) * attention_mask
    token_type_ids = jnp.zeros((B, S), jnp.int32)
    cor_labels = jax.random.randint(k_lab, (B, S), 5, cfg["vocab_size"]) * attention_mask
    prob = jax.random.uniform(k_prob, (B, S, 1), jnp.float32)

    loss, scores, seq_out = forward(
        params, cfg, input_ids, token_type_ids, attention_mask, prob, cor_labels,
        residual_connection=False)
    jax.block_until_ready((loss, scores, seq_out))
    print("KERNEL_OK")
</pallas_src>

<mosaic_0001>
module attributes {stable_mosaic.version = 11 : i64} {
  func.func @_layernorm_kernel(%arg0: i32, %arg1: memref<8x32xf32, #tpu.memory_space<vmem>>, %arg2: memref<1x32xf32, #tpu.memory_space<vmem>>, %arg3: memref<1x32xf32, #tpu.memory_space<vmem>>, %arg4: memref<8x32xbf16, #tpu.memory_space<vmem>>) attributes {dimension_semantics = [#tpu.dimension_semantics<parallel>], iteration_bounds = array<i64: 1>, scalar_prefetch = 0 : i64, scratch_operands = 0 : i64, tpu.core_type = #tpu.core_type<tc>, window_params = [{transform_indices = @transform_0, window_bounds = array<i64: 8, 32>}, {pipeline_mode = #tpu.pipeline_mode<synchronous>, transform_indices = @transform_1, window_bounds = array<i64: 1, 32>}, {pipeline_mode = #tpu.pipeline_mode<synchronous>, transform_indices = @transform_2, window_bounds = array<i64: 1, 32>}, {transform_indices = @transform_3, window_bounds = array<i64: 8, 32>}]} {
    %c0 = arith.constant 0 : index
    %c0_0 = arith.constant 0 : index
    %0 = vector.load %arg1[%c0, %c0_0] : memref<8x32xf32, #tpu.memory_space<vmem>>, vector<8x32xf32>
    %cst = arith.constant dense<0.000000e+00> : vector<8xf32>
    %1 = vector.multi_reduction <add>, %0, %cst [1] : vector<8x32xf32> to vector<8xf32>
    %2 = vector.shape_cast %1 : vector<8xf32> to vector<8x1xf32>
    %cst_1 = arith.constant 3.200000e+01 : f32
    %3 = vector.broadcast %cst_1 : f32 to vector<8x1xf32>
    %4 = arith.divf %2, %3 : vector<8x1xf32>
    %5 = vector.broadcast %4 : vector<8x1xf32> to vector<8x32xf32>
    %6 = arith.subf %0, %5 : vector<8x32xf32>
    %7 = arith.mulf %6, %6 : vector<8x32xf32>
    %cst_2 = arith.constant dense<0.000000e+00> : vector<8xf32>
    %8 = vector.multi_reduction <add>, %7, %cst_2 [1] : vector<8x32xf32> to vector<8xf32>
    %9 = vector.shape_cast %8 : vector<8xf32> to vector<8x1xf32>
    %cst_3 = arith.constant 3.200000e+01 : f32
    %10 = vector.broadcast %cst_3 : f32 to vector<8x1xf32>
    %11 = arith.divf %9, %10 : vector<8x1xf32>
    %cst_4 = arith.constant 9.99999996E-13 : f32
    %12 = vector.broadcast %cst_4 : f32 to vector<8x1xf32>
    %13 = arith.addf %11, %12 : vector<8x1xf32>
    %14 = math.rsqrt %13 : vector<8x1xf32>
    %15 = vector.broadcast %14 : vector<8x1xf32> to vector<8x32xf32>
    %16 = arith.mulf %6, %15 : vector<8x32xf32>
    %c0_5 = arith.constant 0 : index
    %c0_6 = arith.constant 0 : index
    %17 = vector.load %arg2[%c0_5, %c0_6] : memref<1x32xf32, #tpu.memory_space<vmem>>, vector<1x32xf32>
    %18 = vector.broadcast %17 : vector<1x32xf32> to vector<8x32xf32>
    %19 = arith.mulf %16, %18 : vector<8x32xf32>
    %c0_7 = arith.constant 0 : index
    %c0_8 = arith.constant 0 : index
    %20 = vector.load %arg3[%c0_7, %c0_8] : memref<1x32xf32, #tpu.memory_space<vmem>>, vector<1x32xf32>
    %21 = vector.broadcast %20 : vector<1x32xf32> to vector<8x32xf32>
    %22 = arith.addf %19, %21 : vector<8x32xf32>
    %23 = arith.truncf %22 : vector<8x32xf32> to vector<8x32xbf16>
    %c0_9 = arith.constant 0 : index
    %c0_10 = arith.constant 0 : index
    %24 = vector.load %arg4[%c0_9, %c0_10] : memref<8x32xbf16, #tpu.memory_space<vmem>>, vector<8x32xbf16>
    tpu.vector_store %arg4[%c0_9, %c0_10], %23 {strides = array<i32>} : memref<8x32xbf16, #tpu.memory_space<vmem>>, vector<8x32xbf16>,
    return
  }
  func.func @transform_0(%arg0: i32) -> (i32, i32) {
    %c0_i32 = arith.constant 0 : i32
    %c0_i32_0 = arith.constant 0 : i32
    return %arg0, %c0_i32 : i32, i32
  }
  func.func @transform_1(%arg0: i32) -> (i32, i32) {
    %c0_i32 = arith.constant 0 : i32
    %c0_i32_0 = arith.constant 0 : i32
    %c0_i32_1 = arith.constant 0 : i32
    return %c0_i32, %c0_i32_0 : i32, i32
  }
  func.func @transform_2(%arg0: i32) -> (i32, i32) {
    %c0_i32 = arith.constant 0 : i32
    %c0_i32_0 = arith.constant 0 : i32
    %c0_i32_1 = arith.constant 0 : i32
    return %c0_i32, %c0_i32_0 : i32, i32
  }
  func.func @transform_3(%arg0: i32) -> (i32, i32) {
    %c0_i32 = arith.constant 0 : i32
    %c0_i32_0 = arith.constant 0 : i32
    return %arg0, %c0_i32 : i32, i32
  }
}

</mosaic_0001>

<bundles_post_ra>
// kernel: tpu_custom_call.1
= control target key start
LH: loop header
LB: loop body
LE: loop exit
PB: predicated region body
PF: predicated region fallthrough
CT: control target
= control target key end

     0   :  { %8 = vsyncpa [#allocation3], 0  ;;  %s231_s0 = inlined_call_operand.hbm [shape: f32[8,32], index: 0, kind: input, shape index: {}]   ;;  %s232_s1 = inlined_call_operand.hbm [shape: f32[1,32], index: 1, kind: input, shape index: {}]   ;;  %s233_s2 = inlined_call_operand.vmem [shape: f32[1,32], index: 2, kind: input, shape index: {}]   ;;  %s234_s3 = inlined_call_operand.hbm [shape: bf16[8,32], index: 3, kind: output, shape index: {}]  }
   0x1   :  { %9 = vsyncpa [#allocation6], 0 }
   0x2   :  { %10 = vsyncpa [#allocation4], 0  ;;  %s16_s14 = sshll.u32 %s231_s0, 4  ;;  %s193_s15 = smov [#allocation2]   ;;  %s17_s14 = int_to_ptr.hbm [resolvable:$true] %s16_s14 }
   0x3   :  { %s18_s16 = sshll.u32 %s193_s15, 4  ;;  %s27_s19 = sshll.u32 %s232_s1, 4  ;;  %s19_s16 = int_to_ptr.vmem [resolvable:$true] %s18_s16  ;;  %s28_s19 = int_to_ptr.hbm [resolvable:$true] %s27_s19 }
   0x4   :  { %21 = dma.hbm_to_vmem [thread:$0]  %s17_s14, 128, %s19_s16, [#allocation3]  }
   0x5   :  { %s194_s20 = smov [#allocation5]  }
   0x6   :  { %s29_s21 = sshll.u32 %s194_s20, 4  ;;  %s30_s21 = int_to_ptr.vmem [resolvable:$true] %s29_s21 }
   0x7   :  { %32 = dma.hbm_to_vmem [thread:$0]  %s28_s19, 16, %s30_s21, [#allocation6]  }
   0x8   :  { %187 = dma.done.wait [#allocation3], 128  }
   0x9   :  { %188 = vsyncadd [#allocation3], 4294967168 }
   0xa   :  { %189 = dma.done.wait [#allocation6], 16  }
   0xb   :  { %190 = vsyncadd [#allocation6], 4294967280  ;;  %vm44_vm0 = vcmask 261120   ;;  %v43_v0 = vld [vmem:[#allocation2] sm:$0xff]  ;;  %v195_v2 = vmov 32.0   ;;  %s196_s22 = smov [#allocation7]  }
   0xc   :  { %v45_v1 = vsel %vm44_vm0, %v43_v0, 0.0  ;;  %111 = vrcp.f32 %v195_v2  ;;  %v109_v23 = vld [vmem:[#allocation5] ss:$0 sm:$0xff]  ;;  %v110_v26 = vld [vmem:[%s233_s2] ss:$0 sm:$0xff]  ;;  %s92_s23 = sshll.u32 %s196_s22, 4  ;;  %s93_s23 = int_to_ptr.vmem [resolvable:$true] %s92_s23 }
   0xd   :  { %46 = vadd.xlane.f32.xlu0 %v45_v1  ;;  %s94_s26 = sshll.u32 %s234_s3, 4  ;;  %vm85_vm5 = vcmask 257024   ;;  %s95_s26 = int_to_ptr.hbm [resolvable:$true] %s94_s26 }
  0x12   :  { %v112_v3 = vpop.eup %111 }
  0x13   :  { %v49_v4 = vmul.f32 32.0, %v112_v3  ;;  %vm53_vm1 = vweird.f32 %v112_v3 }
  0x15   :  { %v50_v5 = vsub.f32 1.0, %v49_v4 }
  0x17   :  { %v51_v6 = vmul.f32 %v112_v3, %v50_v5 }
  0x19   :  { %v52_v7 = vadd.f32 %v112_v3, %v51_v6 }
  0x1b   :  { %v54_v8 = vsel %vm53_vm1, %v112_v3, %v52_v7 }
  0x80   :  { %v47_v9 = vpop.xlane.xlu0 %46 }
  0x81   :  { %v55_v10 = vmul.f32 %v54_v8, %v47_v9 }
  0x83   :  { %v56_v11 = vsub.f32 %v43_v0, %v55_v10 }
  0x85   :  { %v57_v12 = vmul.f32 %v56_v11, %v56_v11 }
  0x87   :  { %v58_v13 = vsel %vm44_vm0, %v57_v12, 0.0 }
  0x88   :  { %59 = vadd.xlane.f32.xlu0 %v58_v13 }
  0xfb   :  { %v60_v14 = vpop.xlane.xlu0 %59 }
  0xfc   :  { %v61_v15 = vmul.f32 %v60_v14, %v54_v8 }
  0xfe   :  { %v62_v16 = vadd.f32 1e-12, %v61_v15 }
 0x100   :  { %113 = vrsqrt.f32 %v62_v16  ;;  %vm69_vm3 = vweird.f32 %v62_v16 }
 0x106   :  { %v114_v17 = vpop.eup %113 }
 0x107   :  { %v64_v18 = vmul.f32 %v114_v17, %v62_v16  ;;  %vm70_vm2 = vweird.f32 %v114_v17 }
 0x108   :  { %vm71_vm4 = vmor %vm69_vm3, %vm70_vm2 }
 0x109   :  { %v65_v19 = vmul.f32 %v114_v17, %v64_v18 }
 0x10b   :  { %v66_v20 = vmul.f32 0.5, %v65_v19 }
 0x10d   :  { %v67_v21 = vsub.f32 1.5, %v66_v20 }
 0x10f   :  { %v68_v22 = vmul.f32 %v114_v17, %v67_v21 }
 0x111   :  { %v72_v24 = vsel %vm71_vm4, %v114_v17, %v68_v22 }
 0x112   :  { %v73_v25 = vmul.f32 %v72_v24, %v56_v11 }
 0x114   :  { %v78_v27 = vmul.f32 %v109_v23, %v73_v25 }
 0x116   :  { %v83_v28 = vadd.f32 %v110_v26, %v78_v27 }
 0x118   :  { %v84_v29 = vpack.c.bf16 %v83_v28, %v83_v28 }
 0x11a   :  { %86 = vst.msk [vmem:[#allocation7] sm:$0xf] %vm85_vm5, %v84_v29 }
 0x11b   :  { %97 = dma.vmem_to_hbm [thread:$0]  %s93_s23, 64, %s95_s26, [#allocation4]  }
 0x11c   :  { %191 = dma.done.wait [#allocation4], 64  }
 0x11d   :  { %192 = vsyncadd [#allocation4], 4294967232 }
 0x11e   :  { %102 = vsyncpa [#allocation3], 1 }
 0x11f   :  { %103 = vsyncpa [#allocation6], 1 }
 0x120   :  { %104 = vsyncpa [#allocation4], 1 }

</bundles_post_ra>
